<compile_context>
chip_gen: v7x
topology: tpu7x:2x2x1
jax: 0.10.0
libtpu: 0.0.40
codegen_flags: <defaults>
</compile_context>

<pallas_src>
import functools

import jax
import jax.numpy as jnp
from jax.experimental import pallas as pl
from jax.experimental.pallas import tpu as pltpu


# ----------------------------------------------------------------------------
# Kernel
# ----------------------------------------------------------------------------
def _softmax_attention_kernel(x_ref, wkq_ref, bkq_ref, wv_ref, bv_ref,
                              expand_ref, ws_ref, bs_ref, out_ref,
                              *, tb, n, approx_recip):
    # x_ref is a pre-flattened (tb*n, d) slab: tb batch elements per grid step.
    xf = x_ref[...]                                            # (tb*n, d)
    d = wv_ref.shape[1]
    n_c = wkq_ref.shape[1]

    # Attention logits directly from x (Wk folded into qmat in the wrapper):
    #   A = x @ (Wk @ qmat) + bk @ qmat     (smoothing / sqrt(d_c) folded in)
    A = jnp.dot(xf, wkq_ref[...],
                preferred_element_type=jnp.float32) + bkq_ref[...]        # (tb*n, n_c) f32

    # V projection (f32 accumulate, f32 bias).
    V = jnp.dot(xf, wv_ref[...],
                preferred_element_type=jnp.float32) + bv_ref[...]         # (tb*n, d) f32

    # Softmax over the sequence axis.  The (tb*n, n_c) -> (tb, n, n_c) reshape
    # is a free relabel when n is a multiple of the 8-row sublane (n=8 here);
    # for other n it costs a relayout but stays correct.
    A3 = A.reshape(tb, n, n_c)
    A3 = A3 - jnp.max(A3, axis=1, keepdims=True)
    e = jnp.exp(A3)
    denom = jnp.sum(e, axis=1, keepdims=True)
    # Exact reciprocal on the f32 path (1e-4 parity); approx (EUP slot, ~free)
    # on the bf16 path where the tolerance is already loose.
    p = e * pl.reciprocal(denom, approx=approx_recip)                     # (tb, n, n_c) f32
    p2d = p.reshape(tb * n, n_c)

    # expand[h, j] = (j // d_c == h) / n : broadcasts each head's probability
    # across its own d_c feature block and applies the 1/n sequence mean in a
    # single tall MXU matmul (replaces the tb-batched tiny dot_general).
    p_full = jnp.dot(p2d, expand_ref[...],
                     preferred_element_type=jnp.float32)                  # (tb*n, d) f32

    # Weighted mean over the sequence: VPU multiply + XLU sublane reduction.
    y = (p_full * V).reshape(tb, n, d).sum(axis=1)                        # (tb, d) f32

    # Final score projection; (tb, 256) lane-dense output block.
    out_ref[...] = (jnp.dot(y.astype(ws_ref.dtype), ws_ref[...],
                            preferred_element_type=jnp.float32)
                    + bs_ref[...]).astype(out_ref.dtype)


# ----------------------------------------------------------------------------
# Wrapper
# ----------------------------------------------------------------------------
def _tpu_vmem_capacity_bytes():
    """Best-effort per-TensorCore VMEM capacity (falls back to 128 MiB)."""
    try:
        info = pltpu.get_tpu_info()
        cap = getattr(info, "vmem_capacity_bytes", None)
        if cap:
            return int(cap)
    except Exception:
        pass
    try:
        kind = jax.devices()[0].device_kind.lower()
        if "v7" in kind:
            return 64 * 1024 * 1024
    except Exception:
        pass
    return 128 * 1024 * 1024


def softmax_attention_pallas(x, params, *, n_c, d_c, smoothing, tb=None,
                             use_bf16=False):
    b, n, d = x.shape
    assert d == n_c * d_c

    wk, bk, wv, bv, q, ws, bs = (params[k] for k in
                                 ("wk", "bk", "wv", "bv", "q", "ws", "bs"))
    out_dim = ws.shape[1]

    # ---------- parameter glue (plain JAX, evaluated once) ----------
    # onehot[j, h] = (j // d_c == h)
    col = jnp.arange(d) // d_c
    head = jnp.arange(n_c)
    onehot = (col[:, None] == head[None, :]).astype(jnp.float32)          # (d, n_c)
    # qmat[j, h] = Q[h, j % d_c] * smoothing / sqrt(d_c)   (scale folded in)
    scale = jnp.float32(smoothing / (d_c ** 0.5))
    qmat = onehot * q.reshape(-1)[:, None] * scale                        # (d, n_c)
    # Fold the K projection into the logit matmul:  A = x @ wkq + bkq.
    wkq = wk.astype(jnp.float32) @ qmat                                   # (d, n_c)
    bkq = bk.astype(jnp.float32) @ qmat                                   # (1, n_c)
    # expand[h, j] = onehot[j, h] / n                       (mean folded in)
    expand = onehot.T * jnp.float32(1.0 / n)                              # (n_c, d)

    # ---------- dtypes ----------
    # bf16 only on MXU operands; biases / softmax / accumulation stay f32
    # (v5e has no native bf16 VPU/EUP, and accumulation stays exact).
    mm_dtype = jnp.bfloat16 if use_bf16 else jnp.float32
    x = x.astype(mm_dtype)
    wkq_c = wkq.astype(mm_dtype)
    wv_c = wv.astype(mm_dtype)
    ws_c = ws.astype(mm_dtype)
    x_bytes = jnp.dtype(mm_dtype).itemsize

    # ---------- generation-aware VMEM budget ----------
    vmem_cap = _tpu_vmem_capacity_bytes()
    if vmem_cap <= 64 * 1024 * 1024:          # v7x-class (64 MiB / TensorCore)
        vmem_limit = 48 * 1024 * 1024
        tile_budget = 36 * 1024 * 1024
    else:                                     # v5e / v6e (128 MiB)
        vmem_limit = 100 * 1024 * 1024
        tile_budget = 80 * 1024 * 1024

    # ---------- batch tiling ----------
    # Per-batch-element VMEM estimate: double-buffered x/out slabs plus the
    # lane-padded (d -> 128) f32 intermediates (A/e/p, V, p_full, products).
    lane_pad = -(-d // 128) * 128
    per_tb = (2 * n * d * x_bytes             # x slab (double-buffered)
              + 2 * out_dim * 4               # out slab (double-buffered, f32)
              + 5 * n * lane_pad * 4)         # f32 intermediates
    if tb is None:
        tb = max(8, (tile_budget // per_tb) // 8 * 8)
        # Keep >=2 grid steps for big batches so v7x's two TensorCores both
        # get work (batch-tile axis is marked "parallel").
        if b >= 16 and tb >= b:
            tb = -(-b // 2)
    if tb >= b:
        tb = b
        b_pad = b
    else:
        tb = max(8, (tb // 8) * 8)            # sublane-align the output block
        b_pad = -(-b // tb) * tb
    if b_pad != b:
        # Padded rows are computed independently (softmax of a constant row is
        # harmless, no cross-batch interaction) and sliced off below.
        x = jnp.concatenate([x, jnp.zeros((b_pad - b, n, d), x.dtype)], axis=0)

    xf = x.reshape(b_pad * n, d)              # flattened (batch*seq, d) slab
    grid = (b_pad // tb,)

    kernel = functools.partial(_softmax_attention_kernel, tb=tb, n=n,
                               approx_recip=bool(use_bf16))

    out = pl.pallas_call(
        kernel,
        out_shape=jax.ShapeDtypeStruct((b_pad, out_dim), jnp.float32),
        grid_spec=pltpu.PrefetchScalarGridSpec(
            num_scalar_prefetch=0,
            grid=grid,
            in_specs=[
                pl.BlockSpec((tb * n, d), lambda i: (i, 0)),       # x slab (per batch tile)
                pl.BlockSpec((d, n_c), lambda i: (0, 0)),          # wkq = Wk @ qmat
                pl.BlockSpec((1, n_c), lambda i: (0, 0)),          # bkq = bk @ qmat
                pl.BlockSpec((d, d), lambda i: (0, 0)),            # Wv
                pl.BlockSpec((1, d), lambda i: (0, 0)),            # bv
                pl.BlockSpec((n_c, d), lambda i: (0, 0)),          # expand (1/n folded)
                pl.BlockSpec((d, out_dim), lambda i: (0, 0)),      # Ws
                pl.BlockSpec((1, out_dim), lambda i: (0, 0)),      # bs
            ],
            out_specs=pl.BlockSpec((tb, out_dim), lambda i: (i, 0)),
        ),
        compiler_params=pltpu.CompilerParams(
            dimension_semantics=("parallel",),
            vmem_limit_bytes=vmem_limit),
    )(xf, wkq_c, bkq, wv_c, bv, expand, ws_c, bs)

    return out[:b]


# ----------------------------------------------------------------------------
# Reference + params
# ----------------------------------------------------------------------------
def softmax_attention_reference(x, params, *, n_c, d_c, smoothing):
    """Plain-JAX mirror of the PyTorch forward, for validation."""
    b, n, d = x.shape
    K = (x @ params["wk"] + params["bk"]).reshape(b, n, n_c, d_c)
    V = (x @ params["wv"] + params["bv"]).reshape(b, n, n_c, d_c)
    A = smoothing * jnp.einsum("bnhc,hc->bnh", K, params["q"]) / (d_c ** 0.5)
    p = jax.nn.softmax(A, axis=1)
    y = jnp.einsum("bnh,bnhc->bnhc", p, V).mean(axis=1).reshape(b, n_c * d_c)
    return y @ params["ws"] + params["bs"]


def init_params(key, d, n_c, out_dim=256):
    d_c = d // n_c
    ks = jax.random.split(key, 7)
    lin = lambda k, fan_in, shape: jax.random.uniform(
        k, shape, jnp.float32, -1.0 / (fan_in ** 0.5), 1.0 / (fan_in ** 0.5))
    q_bound = (6.0 / (n_c + d_c)) ** 0.5       # xavier_uniform_ bound
    return {
        "wk": lin(ks[0], d, (d, d)),
        "bk": lin(ks[1], d, (1, d)),
        "wv": lin(ks[2], d, (d, d)),
        "bv": lin(ks[3], d, (1, d)),
        "q": jax.random.uniform(ks[4], (n_c, d_c), jnp.float32, -q_bound, q_bound),
        "ws": lin(ks[5], d, (d, out_dim)),
        "bs": lin(ks[6], d, (1, out_dim)),
    }


if __name__ == "__main__":
    N, D = 8, 32
    N_C = 4
    D_C = D // N_C
    SMOOTHING = 1.5

    key = jax.random.PRNGKey(0)
    k_x, k_p, k_x2 = jax.random.split(key, 3)
    params = init_params(k_p, D, N_C)

    # Primary small case (B=2): whole batch fits in a single tile, f32 path.
    x = jax.random.normal(k_x, (2, N, D), dtype=jnp.float32)
    out = softmax_attention_pallas(x, params, n_c=N_C, d_c=D_C, smoothing=SMOOTHING)
    out = jax.block_until_ready(out)
    ref = softmax_attention_reference(x, params, n_c=N_C, d_c=D_C, smoothing=SMOOTHING)
    assert out.shape == (2, 256), out.shape
    assert jnp.allclose(out, ref, atol=1e-4, rtol=1e-4), float(jnp.max(jnp.abs(out - ref)))

    # Batch tiling + padding (B=48, explicit tb=32 -> grid=2, last tile padded).
    x2 = jax.random.normal(k_x2, (48, N, D), dtype=jnp.float32)
    out2 = softmax_attention_pallas(x2, params, n_c=N_C, d_c=D_C,
                                    smoothing=SMOOTHING, tb=32)
    out2 = jax.block_until_ready(out2)
    ref2 = softmax_attention_reference(x2, params, n_c=N_C, d_c=D_C, smoothing=SMOOTHING)
    assert out2.shape == (48, 256), out2.shape
    assert jnp.allclose(out2, ref2, atol=1e-4, rtol=1e-4), float(jnp.max(jnp.abs(out2 - ref2)))

    # bf16 MXU-operand path (bandwidth saver on v6e/v7x), auto tb (>=2 steps),
    # looser parity check as expected for bf16 inputs.
    out3 = softmax_attention_pallas(x2, params, n_c=N_C, d_c=D_C,
                                    smoothing=SMOOTHING, use_bf16=True)
    out3 = jax.block_until_ready(out3)
    assert out3.shape == (48, 256), out3.shape
    assert jnp.allclose(out3, ref2, atol=5e-2, rtol=5e-2), float(jnp.max(jnp.abs(out3 - ref2)))

    print("KERNEL_OK")
</pallas_src>

<mosaic_0001>
module attributes {stable_mosaic.version = 11 : i64} {
  func.func @_softmax_attention_kernel(%arg0: i32, %arg1: memref<16x32xf32, #tpu.memory_space<vmem>>, %arg2: memref<32x4xf32, #tpu.memory_space<vmem>>, %arg3: memref<1x4xf32, #tpu.memory_space<vmem>>, %arg4: memref<32x32xf32, #tpu.memory_space<vmem>>, %arg5: memref<1x32xf32, #tpu.memory_space<vmem>>, %arg6: memref<4x32xf32, #tpu.memory_space<vmem>>, %arg7: memref<32x256xf32, #tpu.memory_space<vmem>>, %arg8: memref<1x256xf32, #tpu.memory_space<vmem>>, %arg9: memref<2x256xf32, #tpu.memory_space<vmem>>) attributes {dimension_semantics = [#tpu.dimension_semantics<parallel>], iteration_bounds = array<i64: 1>, scalar_prefetch = 0 : i64, scratch_operands = 0 : i64, tpu.core_type = #tpu.core_type<tc>, window_params = [{transform_indices = @transform_0, window_bounds = array<i64: 16, 32>}, {pipeline_mode = #tpu.pipeline_mode<synchronous>, transform_indices = @transform_1, window_bounds = array<i64: 32, 4>}, {pipeline_mode = #tpu.pipeline_mode<synchronous>, transform_indices = @transform_2, window_bounds = array<i64: 1, 4>}, {pipeline_mode = #tpu.pipeline_mode<synchronous>, transform_indices = @transform_3, window_bounds = array<i64: 32, 32>}, {pipeline_mode = #tpu.pipeline_mode<synchronous>, transform_indices = @transform_4, window_bounds = array<i64: 1, 32>}, {pipeline_mode = #tpu.pipeline_mode<synchronous>, transform_indices = @transform_5, window_bounds = array<i64: 4, 32>}, {pipeline_mode = #tpu.pipeline_mode<synchronous>, transform_indices = @transform_6, window_bounds = array<i64: 32, 256>}, {pipeline_mode = #tpu.pipeline_mode<synchronous>, transform_indices = @transform_7, window_bounds = array<i64: 1, 256>}, {transform_indices = @transform_8, window_bounds = array<i64: 2, 256>}]} {
    %c0 = arith.constant 0 : index
    %c0_0 = arith.constant 0 : index
    %0 = vector.load %arg1[%c0, %c0_0] : memref<16x32xf32, #tpu.memory_space<vmem>>, vector<16x32xf32>
    %c0_1 = arith.constant 0 : index
    %c0_2 = arith.constant 0 : index
    %1 = vector.load %arg2[%c0_1, %c0_2] : memref<32x4xf32, #tpu.memory_space<vmem>>, vector<32x4xf32>
    %cst = arith.constant dense<0.000000e+00> : vector<16x4xf32>
    %2 = tpu.matmul %0, %1, %cst {dimension_numbers = #tpu.dot_dimension_numbers<[1], [0], [0], [1], [0, 0, 1, 1], [], []>} : vector<16x32xf32>, vector<32x4xf32>, vector<16x4xf32> -> vector<16x4xf32>
    %c0_3 = arith.constant 0 : index
    %c0_4 = arith.constant 0 : index
    %3 = vector.load %arg3[%c0_3, %c0_4] : memref<1x4xf32, #tpu.memory_space<vmem>>, vector<1x4xf32>
    %4 = vector.broadcast %3 : vector<1x4xf32> to vector<16x4xf32>
    %5 = arith.addf %2, %4 : vector<16x4xf32>
    %c0_5 = arith.constant 0 : index
    %c0_6 = arith.constant 0 : index
    %6 = vector.load %arg4[%c0_5, %c0_6] : memref<32x32xf32, #tpu.memory_space<vmem>>, vector<32x32xf32>
    %cst_7 = arith.constant dense<0.000000e+00> : vector<16x32xf32>
    %7 = tpu.matmul %0, %6, %cst_7 {dimension_numbers = #tpu.dot_dimension_numbers<[1], [0], [0], [1], [0, 0, 1, 1], [], []>} : vector<16x32xf32>, vector<32x32xf32>, vector<16x32xf32> -> vector<16x32xf32>
    %c0_8 = arith.constant 0 : index
    %c0_9 = arith.constant 0 : index
    %8 = vector.load %arg5[%c0_8, %c0_9] : memref<1x32xf32, #tpu.memory_space<vmem>>, vector<1x32xf32>
    %9 = vector.broadcast %8 : vector<1x32xf32> to vector<16x32xf32>
    %10 = arith.addf %7, %9 : vector<16x32xf32>
    %11 = vector.shape_cast %5 : vector<16x4xf32> to vector<2x8x4xf32>
    %cst_10 = arith.constant dense<0xFF800000> : vector<2x4xf32>
    %12 = vector.multi_reduction <maximumf>, %11, %cst_10 [1] : vector<2x8x4xf32> to vector<2x4xf32>
    %13 = vector.shape_cast %12 : vector<2x4xf32> to vector<2x1x4xf32>
    %14 = vector.broadcast %13 : vector<2x1x4xf32> to vector<2x8x4xf32>
    %15 = arith.subf %11, %14 : vector<2x8x4xf32>
    %16 = math.exp %15 : vector<2x8x4xf32>
    %cst_11 = arith.constant dense<0.000000e+00> : vector<2x4xf32>
    %17 = vector.multi_reduction <add>, %16, %cst_11 [1] : vector<2x8x4xf32> to vector<2x4xf32>
    %18 = vector.shape_cast %17 : vector<2x4xf32> to vector<2x1x4xf32>
    %19 = tpu.reciprocal %18 : vector<2x1x4xf32> -> vector<2x1x4xf32>
    %20 = vector.broadcast %19 : vector<2x1x4xf32> to vector<2x8x4xf32>
    %21 = arith.mulf %16, %20 : vector<2x8x4xf32>
    %22 = vector.shape_cast %21 : vector<2x8x4xf32> to vector<16x4xf32>
    %c0_12 = arith.constant 0 : index
    %c0_13 = arith.constant 0 : index
    %23 = vector.load %arg6[%c0_12, %c0_13] : memref<4x32xf32, #tpu.memory_space<vmem>>, vector<4x32xf32>
    %cst_14 = arith.constant dense<0.000000e+00> : vector<16x32xf32>
    %24 = tpu.matmul %22, %23, %cst_14 {dimension_numbers = #tpu.dot_dimension_numbers<[1], [0], [0], [1], [0, 0, 1, 1], [], []>} : vector<16x4xf32>, vector<4x32xf32>, vector<16x32xf32> -> vector<16x32xf32>
    %25 = arith.mulf %24, %10 : vector<16x32xf32>
    %26 = vector.shape_cast %25 : vector<16x32xf32> to vector<2x8x32xf32>
    %cst_15 = arith.constant dense<0.000000e+00> : vector<2x32xf32>
    %27 = vector.multi_reduction <add>, %26, %cst_15 [1] : vector<2x8x32xf32> to vector<2x32xf32>
    %c0_16 = arith.constant 0 : index
    %c0_17 = arith.constant 0 : index
    %28 = vector.load %arg7[%c0_16, %c0_17] : memref<32x256xf32, #tpu.memory_space<vmem>>, vector<32x256xf32>
    %cst_18 = arith.constant dense<0.000000e+00> : vector<2x256xf32>
    %29 = tpu.matmul %27, %28, %cst_18 {dimension_numbers = #tpu.dot_dimension_numbers<[1], [0], [0], [1], [0, 0, 1, 1], [], []>} : vector<2x32xf32>, vector<32x256xf32>, vector<2x256xf32> -> vector<2x256xf32>
    %c0_19 = arith.constant 0 : index
    %c0_20 = arith.constant 0 : index
    %30 = vector.load %arg8[%c0_19, %c0_20] : memref<1x256xf32, #tpu.memory_space<vmem>>, vector<1x256xf32>
    %31 = vector.broadcast %30 : vector<1x256xf32> to vector<2x256xf32>
    %32 = arith.addf %29, %31 : vector<2x256xf32>
    %c0_21 = arith.constant 0 : index
    %c0_22 = arith.constant 0 : index
    %33 = vector.load %arg9[%c0_21, %c0_22] : memref<2x256xf32, #tpu.memory_space<vmem>>, vector<2x256xf32>
    tpu.vector_store %arg9[%c0_21, %c0_22], %32 {strides = array<i32>} : memref<2x256xf32, #tpu.memory_space<vmem>>, vector<2x256xf32>,
    return
  }
  func.func @transform_0(%arg0: i32) -> (i32, i32) {
    %c0_i32 = arith.constant 0 : i32
    %c0_i32_0 = arith.constant 0 : i32
    return %arg0, %c0_i32 : i32, i32
  }
  func.func @transform_1(%arg0: i32) -> (i32, i32) {
    %c0_i32 = arith.constant 0 : i32
    %c0_i32_0 = arith.constant 0 : i32
    %c0_i32_1 = arith.constant 0 : i32
    return %c0_i32, %c0_i32_0 : i32, i32
  }
  func.func @transform_2(%arg0: i32) -> (i32, i32) {
    %c0_i32 = arith.constant 0 : i32
    %c0_i32_0 = arith.constant 0 : i32
    %c0_i32_1 = arith.constant 0 : i32
    return %c0_i32, %c0_i32_0 : i32, i32
  }
  func.func @transform_3(%arg0: i32) -> (i32, i32) {
    %c0_i32 = arith.constant 0 : i32
    %c0_i32_0 = arith.constant 0 : i32
    %c0_i32_1 = arith.constant 0 : i32
    return %c0_i32, %c0_i32_0 : i32, i32
  }
  func.func @transform_4(%arg0: i32) -> (i32, i32) {
    %c0_i32 = arith.constant 0 : i32
    %c0_i32_0 = arith.constant 0 : i32
    %c0_i32_1 = arith.constant 0 : i32
    return %c0_i32, %c0_i32_0 : i32, i32
  }
  func.func @transform_5(%arg0: i32) -> (i32, i32) {
    %c0_i32 = arith.constant 0 : i32
    %c0_i32_0 = arith.constant 0 : i32
    %c0_i32_1 = arith.constant 0 : i32
    return %c0_i32, %c0_i32_0 : i32, i32
  }
  func.func @transform_6(%arg0: i32) -> (i32, i32) {
    %c0_i32 = arith.constant 0 : i32
    %c0_i32_0 = arith.constant 0 : i32
    %c0_i32_1 = arith.constant 0 : i32
    return %c0_i32, %c0_i32_0 : i32, i32
  }
  func.func @transform_7(%arg0: i32) -> (i32, i32) {
    %c0_i32 = arith.constant 0 : i32
    %c0_i32_0 = arith.constant 0 : i32
    %c0_i32_1 = arith.constant 0 : i32
    return %c0_i32, %c0_i32_0 : i32, i32
  }
  func.func @transform_8(%arg0: i32) -> (i32, i32) {
    %c0_i32 = arith.constant 0 : i32
    %c0_i32_0 = arith.constant 0 : i32
    return %arg0, %c0_i32 : i32, i32
  }
}

</mosaic_0001>

<bundles_post_ra>
// kernel: tpu_custom_call.1
= control target key start
LH: loop header
LB: loop body
LE: loop exit
PB: predicated region body
PF: predicated region fallthrough
CT: control target
= control target key end

     0   :  { %13 = vsyncpa [#allocation3], 0  ;;  %s1093_s0 = inlined_call_operand.hbm [shape: f32[16,32], index: 0, kind: input, shape index: {}]   ;;  %s1094_s1 = inlined_call_operand.hbm [shape: f32[32,4], index: 1, kind: input, shape index: {}]   ;;  %s1095_s2 = inlined_call_operand.hbm [shape: f32[1,4], index: 2, kind: input, shape index: {}]   ;;  %s1096_s3 = inlined_call_operand.hbm [shape: f32[32,32], index: 3, kind: input, shape index: {}]   ;;  %s1097_s4 = inlined_call_operand.hbm [shape: f32[1,32], index: 4, kind: input, shape index: {}]   ;;  %s1098_s5 = inlined_call_operand.hbm [shape: f32[4,32], index: 5, kind: input, shape index: {}]   ;;  %s1099_s6 = inlined_call_operand.hbm [shape: f32[32,256], index: 6, kind: input, shape index: {}]   ;;  %s1100_s7 = inlined_call_operand.hbm [shape: f32[1,256], index: 7, kind: input, shape index: {}]   ;;  %s1101_s8 = inlined_call_operand.hbm [shape: f32[2,256], index: 8, kind: output, shape index: {}]  }
   0x1   :  { %14 = vsyncpa [#allocation6], 0 }
   0x2   :  { %15 = vsyncpa [#allocation9], 0 }
   0x3   :  { %16 = vsyncpa [#allocation12], 0 }
   0x4   :  { %17 = vsyncpa [#allocation15], 0 }
   0x5   :  { %18 = vsyncpa [#allocation4], 0  ;;  %s890_s27 = smov [#allocation5]   ;;  %s891_s29 = smov [#allocation8]  }
   0x6   :  { %s36_s28 = sshll.u32 %s890_s27, 4  ;;  %s58_s30 = sshll.u32 %s891_s29, 4  ;;  %s37_s28 = int_to_ptr.vmem [resolvable:$true] %s36_s28  ;;  %s949_s30 = int_to_ptr.vmem [resolvable:$true] %s58_s30 }
   0x7   :  { %s680_s11 = scalar_lea.hbm %s1094_s1, 512 }
   0x8   :  { %p681_p0 = scmp.ne.s32.totalorder %s1094_s1, %s680_s11  ;;  %p684_p1 = scmp.lt.u32.totalorder %s680_s11, %s1094_s1 }
   0xa   :  { %p686_p2 = pnand %p684_p1, %p681_p0 }
   0xc   :  { %689 = shalt.err (!%p686_p2)
}
   0xd   :  { %s690_s16 = scalar_lea.vmem %s37_s28, 512  ;;  %p695_p4 = scmp.lt.s32.totalorder %s37_s28, %s37_s28 }
   0xe   :  { %p691_p3 = scmp.ne.s32.totalorder %s37_s28, %s690_s16  ;;  %p696_p5 = scmp.lt.s32.totalorder %s690_s16, %s690_s16 }
  0x10   :  { %p697_p6 = por %p696_p5, %p695_p4 }
  0x12   :  { %p698_p7 = pnand %p697_p6, %p691_p3 }
  0x14   :  { %701 = shalt.err (!%p698_p7)
}
  0x15   :  { %s892_s17 = smov 128   ;;  %s893_s18 = smov 8  }
  0x16   :  { %42 = dma.hbm_to_vmem [thread:$0]  %s1094_s1, 512, %s37_s28, [#allocation6], %s892_s17, %s892_s17, %s893_s18  }
  0x17   :  { %s702_s23 = scalar_lea.hbm %s1096_s3, 512 }
  0x18   :  { %p703_p8 = scmp.ne.s32.totalorder %s1096_s3, %s702_s23  ;;  %p706_p9 = scmp.lt.u32.totalorder %s702_s23, %s1096_s3 }
  0x1a   :  { %p708_p10 = pnand %p706_p9, %p703_p8 }
  0x1c   :  { %711 = shalt.err (!%p708_p10)
}
  0x1d   :  { %s712_s29 = scalar_lea.vmem %s949_s30, 512  ;;  %p717_p12 = scmp.lt.s32.totalorder %s949_s30, %s949_s30 }
  0x1e   :  { %p713_p11 = scmp.ne.s32.totalorder %s949_s30, %s712_s29  ;;  %p718_p13 = scmp.lt.s32.totalorder %s712_s29, %s712_s29 }
  0x20   :  { %p719_p0 = por %p718_p13, %p717_p12 }
  0x22   :  { %p720_p1 = pnand %p719_p0, %p713_p11 }
  0x24   :  { %723 = shalt.err (!%p720_p1)
}
  0x25   :  { %64 = dma.hbm_to_vmem [thread:$0]  %s1096_s3, 512, %s949_s30, [#allocation9], %s892_s17, %s892_s17, %s893_s18  }
  0x26   :  { %s894_s9 = smov [#allocation11]   ;;  %s895_s11 = smov [#allocation2]  }
  0x27   :  { %s81_s10 = sshll.u32 %s894_s9, 4  ;;  %s24_s12 = sshll.u32 %s895_s11, 4  ;;  %s82_s10 = int_to_ptr.vmem [resolvable:$true] %s81_s10  ;;  %s986_s12 = int_to_ptr.vmem [resolvable:$true] %s24_s12 }
  0x28   :  { %s724_s15 = scalar_lea.hbm %s1098_s5, 64 }
  0x29   :  { %p725_p2 = scmp.ne.s32.totalorder %s1098_s5, %s724_s15  ;;  %p728_p3 = scmp.lt.u32.totalorder %s724_s15, %s1098_s5 }
  0x2b   :  { %p730_p4 = pnand %p728_p3, %p725_p2 }
  0x2d   :  { %733 = shalt.err (!%p730_p4)
}
  0x2e   :  { %s734_s3 = scalar_lea.vmem %s82_s10, 64  ;;  %p739_p6 = scmp.lt.s32.totalorder %s82_s10, %s82_s10 }
  0x2f   :  { %p735_p5 = scmp.ne.s32.totalorder %s82_s10, %s734_s3  ;;  %p740_p7 = scmp.lt.s32.totalorder %s734_s3, %s734_s3 }
  0x31   :  { %p741_p8 = por %p740_p7, %p739_p6 }
  0x33   :  { %p742_p9 = pnand %p741_p8, %p735_p5 }
  0x35   :  { %745 = shalt.err (!%p742_p9)
}
  0x36   :  { %84 = dma.hbm_to_vmem [thread:$0]  %s1098_s5, 64, %s82_s10, [#allocation12]  }
  0x37   :  { %s746_s25 = scalar_lea.hbm %s1093_s0, 256 }
  0x38   :  { %p747_p10 = scmp.ne.s32.totalorder %s1093_s0, %s746_s25  ;;  %p750_p11 = scmp.lt.u32.totalorder %s746_s25, %s1093_s0 }
  0x3a   :  { %p752_p12 = pnand %p750_p11, %p747_p10 }
  0x3c   :  { %755 = shalt.err (!%p752_p12)
}
  0x3d   :  { %s756_s28 = scalar_lea.vmem %s986_s12, 256  ;;  %p761_p0 = scmp.lt.s32.totalorder %s986_s12, %s986_s12 }
  0x3e   :  { %p757_p13 = scmp.ne.s32.totalorder %s986_s12, %s756_s28  ;;  %p762_p1 = scmp.lt.s32.totalorder %s756_s28, %s756_s28 }
  0x40   :  { %p763_p2 = por %p762_p1, %p761_p0 }
  0x42   :  { %p764_p3 = pnand %p763_p2, %p757_p13 }
  0x44   :  { %767 = shalt.err (!%p764_p3)
}
  0x45   :  { %30 = dma.hbm_to_vmem [thread:$0]  %s1093_s0, 256, %s986_s12, [#allocation3], %s892_s17, %s892_s17, %s893_s18  }
  0x46   :  { %s896_s10 = smov [#allocation7]   ;;  %s897_s13 = smov [#allocation10]  }
  0x47   :  { %s49_s11 = sshll.u32 %s896_s10, 4  ;;  %s71_s14 = sshll.u32 %s897_s13, 4  ;;  %s50_s11 = int_to_ptr.vmem [resolvable:$true] %s49_s11  ;;  %s72_s14 = int_to_ptr.vmem [resolvable:$true] %s71_s14 }
  0x48   :  { %s768_s19 = scalar_lea.hbm %s1095_s2, 16 }
  0x49   :  { %p769_p4 = scmp.ne.s32.totalorder %s1095_s2, %s768_s19  ;;  %p772_p5 = scmp.lt.u32.totalorder %s768_s19, %s1095_s2 }
  0x4b   :  { %p774_p6 = pnand %p772_p5, %p769_p4 }
  0x4d   :  { %777 = shalt.err (!%p774_p6)
}
  0x4e   :  { %s778_s0 = scalar_lea.vmem %s50_s11, 16  ;;  %s782_s17 = scalar_lea.vmem %s50_s11, 32 }
  0x4f   :  { %p779_p7 = scmp.ne.s32.totalorder %s50_s11, %s778_s0  ;;  %p783_p8 = scmp.lt.s32.totalorder %s50_s11, %s50_s11 }
  0x50   :  { %p784_p9 = scmp.lt.s32.totalorder %s782_s17, %s778_s0 }
  0x52   :  { %p785_p10 = por %p784_p9, %p783_p8 }
  0x54   :  { %p786_p11 = pnand %p785_p10, %p779_p7 }
  0x56   :  { %789 = shalt.err (!%p786_p11)
}
  0x57   :  { %52 = dma.hbm_to_vmem [thread:$0]  %s1095_s2, 16, %s50_s11, [#allocation6]  }
  0x58   :  { %s790_s24 = scalar_lea.hbm %s1097_s4, 16 }
  0x59   :  { %p791_p12 = scmp.ne.s32.totalorder %s1097_s4, %s790_s24  ;;  %p794_p13 = scmp.lt.u32.totalorder %s790_s24, %s1097_s4 }
  0x5b   :  { %p796_p0 = pnand %p794_p13, %p791_p12 }
  0x5d   :  { %799 = shalt.err (!%p796_p0)
}
  0x5e   :  { %s800_s1 = scalar_lea.vmem %s72_s14, 16  ;;  %s804_s28 = scalar_lea.vmem %s72_s14, 32 }
  0x5f   :  { %p801_p1 = scmp.ne.s32.totalorder %s72_s14, %s800_s1  ;;  %p805_p2 = scmp.lt.s32.totalorder %s72_s14, %s72_s14 }
  0x60   :  { %p806_p3 = scmp.lt.s32.totalorder %s804_s28, %s800_s1 }
  0x62   :  { %p807_p4 = por %p806_p3, %p805_p2 }
  0x64   :  { %p808_p5 = pnand %p807_p4, %p801_p1 }
  0x66   :  { %811 = shalt.err (!%p808_p5)
}
  0x67   :  { %74 = dma.hbm_to_vmem [thread:$0]  %s1097_s4, 16, %s72_s14, [#allocation9]  }
  0x68   :  { %s898_s9 = smov [#allocation13]   ;;  %s812_s15 = scalar_lea.hbm %s1099_s6, 1024 }
  0x69   :  { %s90_s10 = sshll.u32 %s898_s9, 4  ;;  %p813_p6 = scmp.ne.s32.totalorder %s1099_s6, %s812_s15  ;;  %s91_s10 = int_to_ptr.vmem [resolvable:$true] %s90_s10 }
  0x6a   :  { %p816_p7 = scmp.lt.u32.totalorder %s812_s15, %s1099_s6 }
  0x6c   :  { %p818_p8 = pnand %p816_p7, %p813_p6 }
  0x6e   :  { %821 = shalt.err (!%p818_p8)
}
  0x6f   :  { %s822_s3 = scalar_lea.vmem %s91_s10, 1024  ;;  %p827_p10 = scmp.lt.s32.totalorder %s91_s10, %s91_s10 }
  0x70   :  { %p823_p9 = scmp.ne.s32.totalorder %s91_s10, %s822_s3  ;;  %p828_p11 = scmp.lt.s32.totalorder %s822_s3, %s822_s3 }
  0x72   :  { %p829_p12 = por %p828_p11, %p827_p10 }
  0x74   :  { %p830_p13 = pnand %p829_p12, %p823_p9 }
  0x76   :  { %833 = shalt.err (!%p830_p13)
}
  0x77   :  { %s899_s4 = smov 256   ;;  %s900_s14 = smov 16  }
  0x78   :  { %96 = dma.hbm_to_vmem [thread:$0]  %s1099_s6, 1024, %s91_s10, [#allocation12], %s899_s4, %s899_s4, %s900_s14  }
  0x79   :  { %s901_s17 = smov [#allocation14]   ;;  %s834_s23 = scalar_lea.hbm %s1100_s7, 32 }
  0x7a   :  { %s103_s18 = sshll.u32 %s901_s17, 4  ;;  %p835_p0 = scmp.ne.s32.totalorder %s1100_s7, %s834_s23  ;;  %s104_s18 = int_to_ptr.vmem [resolvable:$true] %s103_s18 }
  0x7b   :  { %p838_p1 = scmp.lt.u32.totalorder %s834_s23, %s1100_s7 }
  0x7d   :  { %p840_p2 = pnand %p838_p1, %p835_p0 }
  0x7f   :  { %843 = shalt.err (!%p840_p2)
}
  0x80   :  { %s844_s29 = scalar_lea.vmem %s104_s18, 32  ;;  %p849_p4 = scmp.lt.s32.totalorder %s104_s18, %s104_s18 }
  0x81   :  { %p845_p3 = scmp.ne.s32.totalorder %s104_s18, %s844_s29  ;;  %p850_p5 = scmp.lt.s32.totalorder %s844_s29, %s844_s29 }
  0x83   :  { %p851_p6 = por %p850_p5, %p849_p4 }
  0x85   :  { %p852_p7 = pnand %p851_p6, %p845_p3 }
  0x87   :  { %855 = shalt.err (!%p852_p7)
}
  0x88   :  { %106 = dma.hbm_to_vmem [thread:$0]  %s1100_s7, 32, %s104_s18, [#allocation15]  }
  0x89   :  { %878 = dma.done.wait [#allocation3], 256  }
  0x8a   :  { %879 = vsyncadd [#allocation3], 4294967040 }
  0x8b   :  { %880 = dma.done.wait [#allocation6], 528  }
  0x8c   :  { %881 = vsyncadd [#allocation6], 4294966768 }
  0x8d   :  { %882 = dma.done.wait [#allocation9], 528  }
  0x8e   :  { %883 = vsyncadd [#allocation9], 4294966768 }
  0x8f   :  { %884 = dma.done.wait [#allocation12], 1088  }
  0x90   :  { %885 = vsyncadd [#allocation12], 4294966208 }
  0x91   :  { %886 = dma.done.wait [#allocation15], 32  }
  0x92   :  { %887 = vsyncadd [#allocation15], 4294967264  ;;  %vm144_vm0 = vcmask 261120   ;;  %v133_v0 = vld [vmem:[#allocation5] sm:$0xff]  ;;  %v134_v1 = vld [vmem:[#allocation5 + $0x8] sm:$0xff]  ;;  %vm358_vm1 = vcmask 1043456  }
  0x93   :  { %v135_v2 = vld [vmem:[#allocation5 + $0x10] sm:$0xff]  ;;  %v634_v3 = vpack.c.bf16 %v134_v1, %v133_v0  ;;  %v136_v4 = vld [vmem:[#allocation5 + $0x18] sm:$0xff]  ;;  %v226_v8 = vld [vmem:[#allocation8] sm:$0xff]  ;;  %vm312_vm2 = vcmask 31744   ;;  %vm475_vm3 = vcmask 1041409   ;;  %s903_s7 = smov [#allocation16]  }
  0x94   :  { %v131_v5 = vld [vmem:[#allocation2] sm:$0xff]  ;;  %v638_v6 = vpack.c.bf16 %v136_v4, %v135_v2  ;;  %v132_v7 = vld [vmem:[#allocation2 + $0x8] sm:$0xff]  ;;  %v351_v13 = vld [vmem:[#allocation11] sm:$0xf]  ;;  %s568_s28 = sshll.u32 %s903_s7, 4  ;;  %s569_s28 = int_to_ptr.vmem [resolvable:$true] %s568_s28 }
  0x95   :  { %615 = vmatprep.mubr.msk.f32.mxu0 %vm144_vm0, %v131_v5  ;;  %626 = vmatprep.mubr.msk.f32.mxu1 %vm144_vm0, %v131_v5  ;;  %v227_v9 = vld [vmem:[#allocation8 + $0x8] sm:$0xff]  ;;  %v228_v10 = vld [vmem:[#allocation8 + $0x10] sm:$0xff]  ;;  %v229_v12 = vld [vmem:[#allocation8 + $0x18] sm:$0xff]  ;;  %s856_s2 = scalar_lea.vmem %s569_s28, 64  ;;  %p861_p9 = scmp.lt.s32.totalorder %s569_s28, %s569_s28 }
  0x96   :  { %635 = vmatprep.subr.bf16.mxu0 %v634_v3  ;;  %v642_v11 = vpack.c.bf16 %v227_v9, %v226_v8  ;;  %v646_v14 = vpack.c.bf16 %v229_v12, %v228_v10  ;;  %v581_v15 = vld [vmem:[#allocation7] ss:$0 sm:$0xff]  ;;  %v454_v60 = vld [vmem:[#allocation13 + $0x8] sm:$0xff]  ;;  %v453_v63 = vld [vmem:[#allocation13] sm:$0xff]  ;;  %v902_v8 = vmov 0.0   ;;  %p857_p8 = scmp.ne.s32.totalorder %s569_s28, %s856_s2  ;;  %p862_p10 = scmp.lt.s32.totalorder %s856_s2, %s856_s2 }
  0x97   :  { %637 = vmatpush3.bf16.msra.mxu0 %v634_v3  ;;  %v456_v61 = vld [vmem:[#allocation13 + $0x18] sm:$0xff]  ;;  %v455_v0 = vld [vmem:[#allocation13 + $0x10] sm:$0xff]  ;;  %v458_v2 = vld [vmem:[#allocation13 + $0x28] sm:$0xff] }
  0x98   :  { %639 = vmatprep.subr.bf16.mxu0 %v638_v6  ;;  %643 = vmatprep.subr.bf16.mxu1 %v642_v11  ;;  %v650_v62 = vpack.c.bf16 %v456_v61, %v454_v60  ;;  %v652_v1 = vpack.c.bf16 %v455_v0, %v453_v63  ;;  %v460_v3 = vld [vmem:[#allocation13 + $0x38] sm:$0xff]  ;;  %v457_v5 = vld [vmem:[#allocation13 + $0x20] sm:$0xff]  ;;  %p863_p11 = por %p862_p10, %p861_p9 }
  0x99   :  { %645 = vmatpush3.bf16.msra.mxu1 %v642_v11  ;;  %v654_v4 = vpack.c.bf16 %v460_v3, %v458_v2  ;;  %v584_v9 = vld [vmem:[#allocation10] ss:$0 sm:$0xff] }
  0x9a   :  { %647 = vmatprep.subr.bf16.mxu1 %v646_v14  ;;  %p864_p12 = pnand %p863_p11, %p857_p8 }
  0x9b   :  { %641 = vmatpush3.bf16.msra.mxu0 %v638_v6  ;;  %v459_v6 = vld [vmem:[#allocation13 + $0x30] sm:$0xff] }
  0x9c   :  { %629 = vmatprep.subr.msk.mxu0 %vm358_vm1, %v351_v13 }
  0x9d   :  { %649 = vmatpush3.bf16.msra.mxu1 %v646_v14 }
  0x9e   :  { %616 = vmatmul.mubr.msk.f32.vlgmr.msra.gmra.mrb[0].mxu0 %vm144_vm0, %v132_v7  ;;  %651 = vmatprep.subr.bf16.mxu1 %v650_v62 }
  0x9f   :  { %630 = vmatpush3.msk.msra.mxu0 %vm358_vm1, %v351_v13 }
  0xa0   :  { %627 = vmatmul.mubr.msk.f32.vlgmr.msra.gmra.mrb[0].mxu1 %vm144_vm0, %v132_v7  ;;  %v656_v7 = vpack.c.bf16 %v459_v6, %v457_v5 }
  0xa1   :  { %653 = vmatpush1.bf16.msra.mxu1 %v652_v1  ;;  %543 = vmatprep.mubr.f32.mxu1 %v902_v8 }
  0xa2   :  { %655 = vmatprep.subr.bf16.mxu1 %v654_v4 }
  0xa5   :  { %657 = vmatpush1.bf16.msra.mxu1 %v656_v7 }
 0x171   :  { %v617_v16 = vpop.f32.mrb[0].mxu0 }
 0x172   :  { %v223_v17 = vadd.f32 %v617_v16, %v581_v15  ;;  %v217_v18 = vpop.f32.mrb[1].mxu0 }
 0x173   :  { %v218_v19 = vadd.f32 %v581_v15, %v217_v18  ;;  %v628_v58 = vpop.f32.mrb[0].mxu1 }
 0x174   :  { %v320_v20 = vsel %vm312_vm2, %v223_v17, -inf  ;;  %v303_v59 = vpop.f32.mrb[1].mxu1  ;;  %v309_v10 = vadd.f32 %v628_v58, %v584_v9 }
 0x175   :  { %v321_v21 = vrot.slane %v320_v20, 4  ;;  %v313_v22 = vsel %vm312_vm2, %v218_v19, -inf  ;;  %v304_v11 = vadd.f32 %v584_v9, %v303_v59 }
 0x176   :  { %v314_v23 = vrot.slane %v313_v22, 4 }
 0x177   :  { %v322_v24 = vmax.f32 %v320_v20, %v321_v21 }
 0x178   :  { %v315_v25 = vmax.f32 %v313_v22, %v314_v23 }
 0x179   :  { %v323_v26 = vrot.slane %v322_v24, 2 }
 0x17a   :  { %v316_v27 = vrot.slane %v315_v25, 2 }
 0x17b   :  { %v324_v28 = vmax.f32 %v322_v24, %v323_v26 }
 0x17c   :  { %v317_v29 = vmax.f32 %v315_v25, %v316_v27 }
 0x17d   :  { %v325_v30 = vrot.slane %v324_v28, 1 }
 0x17e   :  { %v318_v31 = vrot.slane %v317_v29, 1 }
 0x17f   :  { %v326_v32 = vmax.f32 %v324_v28, %v325_v30 }
 0x180   :  { %v319_v33 = vmax.f32 %v317_v29, %v318_v31  ;;  %v463_v31 = vlaneseq }
 0x181   :  { %v328_v34 = vsub.f32 %v223_v17, %v326_v32 }
 0x182   :  { %v327_v35 = vsub.f32 %v218_v19, %v319_v33  ;;  %v464_v32 = vshrl.u32 %v463_v31, 7 }
 0x183   :  { %v331_v36 = vmul.f32 1.442695, %v328_v34  ;;  %v461_v34 = vld [vmem:[#allocation14] sm:$0x3] }
 0x184   :  { %v329_v37 = vmul.f32 1.442695, %v327_v35  ;;  %v465_v33 = vsub.s32 0, %v464_v32  ;;  %v469_v35 = vsub.s32 1, %v464_v32 }
 0x185   :  { %672 = vpow2.f32 %v331_v36 }
 0x186   :  { %674 = vpow2.f32 %v329_v37  ;;  %v466_v36 = vrot.slane %v461_v34, %v465_v33  ;;  %v470_v37 = vrot.slane %v461_v34, %v469_v35 }
 0x18f   :  { %v673_v38 = vpop.eup %672 }
 0x190   :  { %v675_v39 = vpop.eup %674  ;;  %v340_v40 = vsel %vm312_vm2, %v673_v38, 0.0 }
 0x191   :  { %v341_v41 = vrot.slane %v340_v40, 4  ;;  %v333_v42 = vsel %vm312_vm2, %v675_v39, 0.0 }
 0x192   :  { %v334_v43 = vrot.slane %v333_v42, 4 }
 0x193   :  { %v342_v44 = vadd.f32 %v341_v41, %v340_v40 }
 0x194   :  { %v335_v45 = vadd.f32 %v334_v43, %v333_v42 }
 0x195   :  { %v343_v46 = vrot.slane %v342_v44, 2 }
 0x196   :  { %v336_v47 = vrot.slane %v335_v45, 2 }
 0x197   :  { %v344_v48 = vadd.f32 %v343_v46, %v342_v44 }
 0x198   :  { %v337_v49 = vadd.f32 %v336_v47, %v335_v45 }
 0x199   :  { %v345_v50 = vrot.slane %v344_v48, 1 }
 0x19a   :  { %v338_v51 = vrot.slane %v337_v49, 1 }
 0x19b   :  { %v346_v52 = vadd.f32 %v345_v50, %v344_v48 }
 0x19c   :  { %v339_v53 = vadd.f32 %v338_v51, %v337_v49 }
 0x19d   :  { %676 = vrcp.f32 %v346_v52 }
 0x19e   :  { %678 = vrcp.f32 %v339_v53 }
 0x1a7   :  { %v677_v54 = vpop.eup %676 }
 0x1a8   :  { %v679_v55 = vpop.eup %678  ;;  %v350_v57 = vmul.f32 %v677_v54, %v673_v38 }
 0x1a9   :  { %v349_v56 = vmul.f32 %v679_v55, %v675_v39 }
 0x1ab   :  { %631 = vmatprep.mubr.msk.f32.mxu0 %vm312_vm2, %v349_v56 }
 0x1ac   :  { %632 = vmatmul.mubr.msk.f32.vlgmr.msra.gmra.mrb[2].mxu0 %vm312_vm2, %v350_v57 }
 0x27f   :  { %v633_v12 = vpop.f32.mrb[2].mxu0 }
 0x280   :  { %v438_v13 = vmul.f32 %v633_v12, %v309_v10  ;;  %v428_v14 = vpop.f32.mrb[3].mxu0 }
 0x281   :  { %v437_v15 = vmul.f32 %v428_v14, %v304_v11 }
 0x282   :  { %v446_v16 = vsel %vm144_vm0, %v438_v13, 0.0 }
 0x283   :  { %v447_v17 = vrot.slane %v446_v16, 4  ;;  %v439_v18 = vsel %vm144_vm0, %v437_v15, 0.0 }
 0x284   :  { %v440_v19 = vrot.slane %v439_v18, 4 }
 0x285   :  { %v448_v20 = vadd.f32 %v447_v17, %v446_v16 }
 0x286   :  { %v441_v21 = vadd.f32 %v440_v19, %v439_v18 }
 0x287   :  { %v449_v22 = vrot.slane %v448_v20, 2 }
 0x288   :  { %v442_v23 = vrot.slane %v441_v21, 2 }
 0x289   :  { %v450_v24 = vadd.f32 %v449_v22, %v448_v20 }
 0x28a   :  { %v443_v25 = vadd.f32 %v442_v23, %v441_v21 }
 0x28b   :  { %v451_v26 = vrot.slane %v450_v24, 1 }
 0x28c   :  { %v444_v27 = vrot.slane %v443_v25, 1 }
 0x28d   :  { %v452_v28 = vadd.f32 %v451_v26, %v450_v24 }
 0x28e   :  { %v445_v29 = vadd.f32 %v444_v27, %v443_v25 }
 0x290   :  { %v476_v30 = vsel %vm475_vm3, %v452_v28, %v445_v29 }
 0x291   :  { %590 = vmatmul.mubr.msk.f32.vlgmr.msra.gmra.mrb[2].mxu1 %vm144_vm0, %v476_v30 }
 0x364   :  { %v545_v38 = vpop.f32.mrb[2].mxu1 }
 0x365   :  { %v546_v39 = vadd.f32 %v545_v38, %v466_v36  ;;  %v547_v40 = vpop.f32.mrb[3].mxu1 }
 0x366   :  { %v548_v41 = vadd.f32 %v547_v40, %v470_v37 }
 0x368   :  { %v552_v42 = vcombine.low %v546_v39, %v548_v41 }
 0x36a   :  { %591 = vst.sshfl [vmem:[#allocation16] sm:$0x33 pattern:$0x76325410] %v552_v42 }
 0x36b   :  { %867 = shalt.err (!%p864_p12)
}
 0x36c   :  { %s868_s10 = scalar_lea.hbm %s1101_s8, 64 }
 0x36d   :  { %p869_p13 = scmp.ne.s32.totalorder %s1101_s8, %s868_s10  ;;  %p872_p0 = scmp.lt.u32.totalorder %s868_s10, %s1101_s8 }
 0x36f   :  { %p874_p1 = pnand %p872_p0, %p869_p13 }
 0x371   :  { %877 = shalt.err (!%p874_p1)
}
 0x372   :  { %571 = dma.vmem_to_hbm [thread:$0]  %s569_s28, 64, %s1101_s8, [#allocation4]  }
 0x373   :  { %888 = dma.done.wait [#allocation4], 64  }
 0x374   :  { %889 = vsyncadd [#allocation4], 4294967232 }
 0x375   :  { %575 = vsyncpa [#allocation3], 1 }
 0x376   :  { %576 = vsyncpa [#allocation6], 1 }
 0x377   :  { %577 = vsyncpa [#allocation9], 1 }
 0x378   :  { %578 = vsyncpa [#allocation12], 1 }
 0x379   :  { %579 = vsyncpa [#allocation15], 1 }
 0x37a   :  { %580 = vsyncpa [#allocation4], 1 }

</bundles_post_ra>
